<compile_context>
chip_gen: v7x
topology: tpu7x:2x2x1
jax: 0.10.0
libtpu: 0.0.40
codegen_flags: <defaults>
</compile_context>

<pallas_src>
import functools
import math

import jax
import jax.numpy as jnp
from jax.experimental import pallas as pl
from jax.experimental.pallas import tpu as pltpu


def _round_up(x, n):
    return ((x + n - 1) // n) * n


def _arc_kernel(f_ref, w_ref, irn_ref, icn_ref, o_ref, acc_ref, *,
                s, cos_m, sin_m, c_valid, tk, w_resident, precision):
    k = pl.program_id(1)

    @pl.when(k == 0)
    def _():
        acc_ref[...] = jnp.zeros_like(acc_ref)

    f = f_ref[...]                                    # [tm, tk]
    if w_resident:
        # W is fully resident in VMEM (DMA'd once); slice the current K chunk.
        off = pl.multiple_of(k * tk, tk)
        w = w_ref[pl.ds(off, tk), :]                  # [tk, Cp]
    else:
        w = w_ref[...]                                # [tk, Cp]

    # MXU partial product with f32 accumulation.
    acc_ref[...] += jnp.dot(f, w, preferred_element_type=jnp.float32,
                            precision=precision)

    @pl.when(k == pl.num_programs(1) - 1)
    def _():
        # cos = (feat @ W) * (0.1 / ||feat_b||) * (1 / ||W_:,c||)
        # (the /10 is folded into the precomputed row term irn).
        cos = acc_ref[...] * irn_ref[...] * icn_ref[...]
        # a = acos(cos); sin(a) >= 0; cos(a+m) = cos*cos_m - sin(a)*sin_m
        sin_a = jnp.sqrt(jnp.maximum(jnp.float32(1.0) - cos * cos,
                                     jnp.float32(0.0)))
        s_f = jnp.float32(s)
        z_m = s_f * (cos * jnp.float32(cos_m) - sin_a * jnp.float32(sin_m))
        e = jnp.exp(s_f * cos)
        # Row-sum over valid classes only (padded lanes contribute nothing).
        col = jax.lax.broadcasted_iota(jnp.int32, e.shape, 1)
        sum_e = jnp.sum(jnp.where(col < c_valid, e, jnp.float32(0.0)),
                        axis=1, keepdims=True)
        # log(top / (top + down)) == z_m - log(exp(z_m) + sum_e - e)
        o_ref[...] = (z_m - jnp.log(jnp.exp(z_m) + sum_e - e)).astype(o_ref.dtype)


def arc_forward(feature, W, m=1.0, s=10.0, *, tm=256, tk=1024,
                matmul_dtype=None, precision=jax.lax.Precision.HIGHEST,
                w_resident=None):
    """feature: [B, D], W: [D, C] -> [B, C] float32 (Arc.forward semantics)."""
    B, D = feature.shape
    D2, C = W.shape
    assert D == D2

    LANE = 128
    # bf16 packs 16 rows per sublane group -> use 16-row granularity there.
    if matmul_dtype is not None and jnp.dtype(matmul_dtype).itemsize == 2:
        sub = 16
    else:
        sub = 8

    c_pad = max(_round_up(C, LANE), LANE)            # lane-dense output slab
    tk = min(tk, _round_up(D, LANE))
    tm = min(tm, _round_up(B, sub))
    # v7x megacore: give the "parallel" batch axis >= 2 grid steps when the
    # batch permits, so both TensorCores get work.
    if _round_up(B, tm) // tm < 2 and B > sub:
        tm = max(sub, _round_up(-(-B // 2), sub))
    b_pad = _round_up(B, tm)
    d_pad = _round_up(D, tk)

    # Inverse norms precomputed from the ORIGINAL (f32) arrays; the /10 of the
    # module is folded into the row term.  eps matches F.normalize (1e-12).
    f32 = jnp.float32
    eps2 = f32(1e-24)
    rss = jnp.sum(jnp.square(feature.astype(f32)), axis=1, keepdims=True)
    css = jnp.sum(jnp.square(W.astype(f32)), axis=0, keepdims=True)
    inv_rn = f32(0.1) * jax.lax.rsqrt(jnp.maximum(rss, eps2))   # [B, 1]
    inv_cn = jax.lax.rsqrt(jnp.maximum(css, eps2))              # [1, C]
    if b_pad != B:
        inv_rn = jnp.pad(inv_rn, ((0, b_pad - B), (0, 0)))
    if c_pad != C:
        inv_cn = jnp.pad(inv_cn, ((0, 0), (0, c_pad - C)))

    f_in = feature
    if (b_pad, d_pad) != (B, D):
        f_in = jnp.pad(feature, ((0, b_pad - B), (0, d_pad - D)))
    w_in = W
    if (d_pad, c_pad) != (D, C):
        w_in = jnp.pad(W, ((0, d_pad - D), (0, c_pad - C)))
    if matmul_dtype is not None:
        f_in = f_in.astype(matmul_dtype)
        w_in = w_in.astype(matmul_dtype)

    # Precision: explicit f32 MXU precision only when both operands are f32.
    if f_in.dtype == jnp.float32 and w_in.dtype == jnp.float32:
        prec = precision
    else:
        prec = None

    # ---- VMEM budgeting (per-generation) ------------------------------------
    try:
        vmem_cap = int(pltpu.get_tpu_info().vmem_capacity_bytes)
    except Exception:
        vmem_cap = 64 * 1024 * 1024        # conservative (v7x per-TC)

    f_item = jnp.dtype(f_in.dtype).itemsize
    w_item = jnp.dtype(w_in.dtype).itemsize
    base = (2 * tm * tk * f_item           # feature tile (double-buffered)
            + 2 * tm * c_pad * 4           # output tile (double-buffered)
            + tm * c_pad * 4               # f32 accumulator scratch
            + 2 * tm * LANE * 4            # inv row-norm block (lane-padded)
            + 2 * 8 * c_pad * 4)           # inv col-norm block (sublane-padded)
    w_bytes_res = 2 * d_pad * c_pad * w_item
    w_bytes_stream = 2 * tk * c_pad * w_item
    if w_resident is None:
        w_resident = (base + w_bytes_res) <= int(0.7 * vmem_cap)
    footprint = base + (w_bytes_res if w_resident else w_bytes_stream)
    vmem_limit = int(min(vmem_cap,
                         max(32 * 1024 * 1024,
                             int(footprint * 1.25) + (4 << 20))))

    if w_resident:
        # Constant block index -> W is DMA'd into VMEM once and stays resident.
        w_spec = pl.BlockSpec((d_pad, c_pad), lambda i, k: (0, 0))
    else:
        w_spec = pl.BlockSpec((tk, c_pad), lambda i, k: (k, 0))

    kernel = functools.partial(
        _arc_kernel, s=float(s), cos_m=math.cos(m), sin_m=math.sin(m),
        c_valid=C, tk=tk, w_resident=bool(w_resident), precision=prec)

    grid = (b_pad // tm, d_pad // tk)
    out = pl.pallas_call(
        kernel,
        out_shape=jax.ShapeDtypeStruct((b_pad, c_pad), jnp.float32),
        grid=grid,
        in_specs=[
            pl.BlockSpec((tm, tk), lambda i, k: (i, k)),
            w_spec,
            pl.BlockSpec((tm, 1), lambda i, k: (i, 0)),
            pl.BlockSpec((1, c_pad), lambda i, k: (0, 0)),
        ],
        out_specs=pl.BlockSpec((tm, c_pad), lambda i, k: (i, 0)),
        scratch_shapes=[
            pltpu.VMEM((tm, c_pad), jnp.float32),    # matmul accumulator
        ],
        compiler_params=pltpu.CompilerParams(
            dimension_semantics=("parallel", "arbitrary"),
            vmem_limit_bytes=vmem_limit,
        ),
    )(f_in, w_in, inv_rn, inv_cn)

    return out[:B, :C]


if __name__ == "__main__":
    # Small deterministic setup (module defaults are feature_dim=1000, cls_dim=3;
    # use smaller feature_dim for the test). tk=128 exercises multi-tile K
    # accumulation; batch=16 exercises the 2-way parallel split of the B axis.
    batch, feature_dim, cls_dim = 16, 384, 3

    key = jax.random.PRNGKey(0)
    k_feat, k_w = jax.random.split(key)
    feature = jax.random.normal(k_feat, (batch, feature_dim), dtype=jnp.float32)
    W = jax.random.normal(k_w, (feature_dim, cls_dim), dtype=jnp.float32)

    # Pure-JAX reference (same math as the PyTorch module).
    x = feature / jnp.maximum(jnp.linalg.norm(feature, axis=1, keepdims=True), 1e-12)
    w = W / jnp.maximum(jnp.linalg.norm(W, axis=0, keepdims=True), 1e-12)
    cos = jnp.dot(x, w, precision=jax.lax.Precision.HIGHEST) / 10.0
    a = jnp.arccos(cos)
    top = jnp.exp(10.0 * jnp.cos(a + 1.0))
    e = jnp.exp(10.0 * jnp.cos(a))
    down = jnp.sum(e, axis=1, keepdims=True) - e
    ref = jnp.log(top / (top + down))

    # 1) Default f32 path (resident W, multi-step K accumulation).
    out = jax.block_until_ready(arc_forward(feature, W, m=1.0, s=10.0, tk=128))
    assert out.shape == (batch, cls_dim)
    assert jnp.allclose(out, ref, atol=1e-4, rtol=1e-4)

    # 2) Streamed-W fallback path (large-W regime).
    out_stream = jax.block_until_ready(
        arc_forward(feature, W, m=1.0, s=10.0, tk=128, w_resident=False))
    assert jnp.allclose(out_stream, ref, atol=1e-4, rtol=1e-4)

    # 3) bf16 MXU-operand fast path (v6e/v7x); norms stay exact f32.
    out_bf16 = jax.block_until_ready(
        arc_forward(feature, W, m=1.0, s=10.0, tk=128, matmul_dtype=jnp.bfloat16))
    assert out_bf16.shape == (batch, cls_dim)
    assert jnp.allclose(out_bf16, ref, atol=5e-2, rtol=5e-2)

    print("KERNEL_OK")
</pallas_src>

<mosaic_0001>
module attributes {stable_mosaic.version = 11 : i64} {
  func.func @_arc_kernel(%arg0: i32, %arg1: i32, %arg2: memref<8x128xf32, #tpu.memory_space<vmem>>, %arg3: memref<384x128xf32, #tpu.memory_space<vmem>>, %arg4: memref<8x1xf32, #tpu.memory_space<vmem>>, %arg5: memref<1x128xf32, #tpu.memory_space<vmem>>, %arg6: memref<8x128xf32, #tpu.memory_space<vmem>>, %arg7: memref<8x128xf32, #tpu.memory_space<vmem>>) attributes {dimension_semantics = [#tpu.dimension_semantics<parallel>, #tpu.dimension_semantics<arbitrary>], iteration_bounds = array<i64: 2, 3>, scalar_prefetch = 0 : i64, scratch_operands = 1 : i64, tpu.core_type = #tpu.core_type<tc>, window_params = [{transform_indices = @transform_0, window_bounds = array<i64: 8, 128>}, {pipeline_mode = #tpu.pipeline_mode<synchronous>, transform_indices = @transform_1, window_bounds = array<i64: 384, 128>}, {transform_indices = @transform_2, window_bounds = array<i64: 8, 1>}, {pipeline_mode = #tpu.pipeline_mode<synchronous>, transform_indices = @transform_3, window_bounds = array<i64: 1, 128>}, {transform_indices = @transform_4, window_bounds = array<i64: 8, 128>}]} {
    %c0_i32 = arith.constant 0 : i32
    %0 = arith.cmpi eq, %arg1, %c0_i32 : i32
    %1 = arith.extui %0 : i1 to i32
    %c0_i32_0 = arith.constant 0 : i32
    %2 = arith.cmpi ne, %1, %c0_i32_0 : i32
    scf.if %2 {
      %cst_8 = arith.constant 0.000000e+00 : f32
      %15 = vector.broadcast %cst_8 : f32 to vector<8x128xf32>
      %c0_9 = arith.constant 0 : index
      %c0_10 = arith.constant 0 : index
      %16 = vector.load %arg7[%c0_9, %c0_10] : memref<8x128xf32, #tpu.memory_space<vmem>>, vector<8x128xf32>
      tpu.vector_store %arg7[%c0_9, %c0_10], %15 {strides = array<i32>} : memref<8x128xf32, #tpu.memory_space<vmem>>, vector<8x128xf32>,
    } else {
    }
    %c0 = arith.constant 0 : index
    %c0_1 = arith.constant 0 : index
    %3 = vector.load %arg2[%c0, %c0_1] : memref<8x128xf32, #tpu.memory_space<vmem>>, vector<8x128xf32>
    %c128_i32 = arith.constant 128 : i32
    %4 = arith.muli %arg1, %c128_i32 : i32
    %5 = tpu.assume_multiple %4, 128 : i32
    %6 = arith.index_cast %5 : i32 to index
    %c0_2 = arith.constant 0 : index
    %7 = vector.load %arg3[%6, %c0_2] : memref<384x128xf32, #tpu.memory_space<vmem>>, vector<128x128xf32>
    %c0_3 = arith.constant 0 : index
    %c0_4 = arith.constant 0 : index
    %8 = vector.load %arg7[%c0_3, %c0_4] : memref<8x128xf32, #tpu.memory_space<vmem>>, vector<8x128xf32>
    %cst = arith.constant dense<0.000000e+00> : vector<8x128xf32>
    %9 = tpu.matmul %3, %7, %cst {dimension_numbers = #tpu.dot_dimension_numbers<[1], [0], [0], [1], [0, 0, 1, 1], [], []>, precision = #tpu.contract_precision<fp32>} : vector<8x128xf32>, vector<128x128xf32>, vector<8x128xf32> -> vector<8x128xf32>
    %10 = arith.addf %8, %9 : vector<8x128xf32>
    %c0_5 = arith.constant 0 : index
    %c0_6 = arith.constant 0 : index
    %11 = vector.load %arg7[%c0_5, %c0_6] : memref<8x128xf32, #tpu.memory_space<vmem>>, vector<8x128xf32>
    tpu.vector_store %arg7[%c0_5, %c0_6], %10 {strides = array<i32>} : memref<8x128xf32, #tpu.memory_space<vmem>>, vector<8x128xf32>,
    %c2_i32 = arith.constant 2 : i32
    %12 = arith.cmpi eq, %arg1, %c2_i32 : i32
    %13 = arith.extui %12 : i1 to i32
    %c0_i32_7 = arith.constant 0 : i32
    %14 = arith.cmpi ne, %13, %c0_i32_7 : i32
    scf.if %14 {
      %c0_8 = arith.constant 0 : index
      %c0_9 = arith.constant 0 : index
      %15 = vector.load %arg7[%c0_8, %c0_9] : memref<8x128xf32, #tpu.memory_space<vmem>>, vector<8x128xf32>
      %c0_10 = arith.constant 0 : index
      %c0_11 = arith.constant 0 : index
      %16 = vector.load %arg4[%c0_10, %c0_11] : memref<8x1xf32, #tpu.memory_space<vmem>>, vector<8x1xf32>
      %17 = vector.broadcast %16 : vector<8x1xf32> to vector<8x128xf32>
      %18 = arith.mulf %15, %17 : vector<8x128xf32>
      %c0_12 = arith.constant 0 : index
      %c0_13 = arith.constant 0 : index
      %19 = vector.load %arg5[%c0_12, %c0_13] : memref<1x128xf32, #tpu.memory_space<vmem>>, vector<1x128xf32>
      %20 = vector.broadcast %19 : vector<1x128xf32> to vector<8x128xf32>
      %21 = arith.mulf %18, %20 : vector<8x128xf32>
      %22 = arith.mulf %21, %21 : vector<8x128xf32>
      %cst_14 = arith.constant 1.000000e+00 : f32
      %23 = vector.broadcast %cst_14 : f32 to vector<8x128xf32>
      %24 = arith.subf %23, %22 : vector<8x128xf32>
      %cst_15 = arith.constant 0.000000e+00 : f32
      %25 = vector.broadcast %cst_15 : f32 to vector<8x128xf32>
      %26 = arith.maximumf %24, %25 : vector<8x128xf32>
      %27 = math.sqrt %26 : vector<8x128xf32>
      %cst_16 = arith.constant 0.540302277 : f32
      %28 = vector.broadcast %cst_16 : f32 to vector<8x128xf32>
      %29 = arith.mulf %21, %28 : vector<8x128xf32>
      %cst_17 = arith.constant 0.841470957 : f32
      %30 = vector.broadcast %cst_17 : f32 to vector<8x128xf32>
      %31 = arith.mulf %27, %30 : vector<8x128xf32>
      %32 = arith.subf %29, %31 : vector<8x128xf32>
      %cst_18 = arith.constant 1.000000e+01 : f32
      %33 = vector.broadcast %cst_18 : f32 to vector<8x128xf32>
      %34 = arith.mulf %33, %32 : vector<8x128xf32>
      %cst_19 = arith.constant 1.000000e+01 : f32
      %35 = vector.broadcast %cst_19 : f32 to vector<8x128xf32>
      %36 = arith.mulf %35, %21 : vector<8x128xf32>
      %37 = math.exp %36 : vector<8x128xf32>
      %38 = tpu.iota {dimensions = array<i32: 1>} : vector<8x128xi32>
      %c3_i32 = arith.constant 3 : i32
      %39 = vector.broadcast %c3_i32 : i32 to vector<8x128xi32>
      %40 = arith.cmpi slt, %38, %39 : vector<8x128xi32>
      %cst_20 = arith.constant 0.000000e+00 : f32
      %41 = vector.broadcast %cst_20 : f32 to vector<8x128xf32>
      %42 = arith.select %40, %37, %41 : vector<8x128xi1>, vector<8x128xf32>
      %cst_21 = arith.constant dense<0.000000e+00> : vector<8xf32>
      %43 = vector.multi_reduction <add>, %42, %cst_21 [1] : vector<8x128xf32> to vector<8xf32>
      %44 = vector.shape_cast %43 : vector<8xf32> to vector<8x1xf32>
      %45 = math.exp %34 : vector<8x128xf32>
      %46 = vector.broadcast %44 : vector<8x1xf32> to vector<8x128xf32>
      %47 = arith.addf %45, %46 : vector<8x128xf32>
      %48 = arith.subf %47, %37 : vector<8x128xf32>
      %49 = math.log %48 : vector<8x128xf32>
      %50 = arith.subf %34, %49 : vector<8x128xf32>
      %c0_22 = arith.constant 0 : index
      %c0_23 = arith.constant 0 : index
      %51 = vector.load %arg6[%c0_22, %c0_23] : memref<8x128xf32, #tpu.memory_space<vmem>>, vector<8x128xf32>
      tpu.vector_store %arg6[%c0_22, %c0_23], %50 {strides = array<i32>} : memref<8x128xf32, #tpu.memory_space<vmem>>, vector<8x128xf32>,
    } else {
    }
    return
  }
  func.func @transform_0(%arg0: i32, %arg1: i32) -> (i32, i32) {
    %c0_i32 = arith.constant 0 : i32
    return %arg0, %arg1 : i32, i32
  }
  func.func @transform_1(%arg0: i32, %arg1: i32) -> (i32, i32) {
    %c0_i32 = arith.constant 0 : i32
    %c0_i32_0 = arith.constant 0 : i32
    %c0_i32_1 = arith.constant 0 : i32
    return %c0_i32, %c0_i32_0 : i32, i32
  }
  func.func @transform_2(%arg0: i32, %arg1: i32) -> (i32, i32) {
    %c0_i32 = arith.constant 0 : i32
    %c0_i32_0 = arith.constant 0 : i32
    return %arg0, %c0_i32 : i32, i32
  }
  func.func @transform_3(%arg0: i32, %arg1: i32) -> (i32, i32) {
    %c0_i32 = arith.constant 0 : i32
    %c0_i32_0 = arith.constant 0 : i32
    %c0_i32_1 = arith.constant 0 : i32
    return %c0_i32, %c0_i32_0 : i32, i32
  }
  func.func @transform_4(%arg0: i32, %arg1: i32) -> (i32, i32) {
    %c0_i32 = arith.constant 0 : i32
    %c0_i32_0 = arith.constant 0 : i32
    return %arg0, %c0_i32 : i32, i32
  }
}

</mosaic_0001>

<bundles_post_ra>
// kernel: tpu_custom_call.1
= control target key start
LH: loop header
LB: loop body
LE: loop exit
PB: predicated region body
PF: predicated region fallthrough
CT: control target
= control target key end

     0   :  { %s2484_s0 = inlined_call_operand.hbm [shape: f32[16,384], index: 0, kind: input, shape index: {}]   ;;  %s2485_s1 = inlined_call_operand.hbm [shape: f32[384,128], index: 1, kind: input, shape index: {}]   ;;  %s2486_s2 = inlined_call_operand.vmem [shape: f32[16,1], index: 2, kind: input, shape index: {}]   ;;  %s2487_s3 = inlined_call_operand.vmem [shape: f32[1,128], index: 3, kind: input, shape index: {}]   ;;  %s2488_s4 = inlined_call_operand.hbm [shape: f32[16,128], index: 4, kind: output, shape index: {}]  }
   0x1   :  { %2501 = sst [smem:[#allocation17_spill]] %s2485_s1 }
   0x2   :  { %2502 = sst [smem:[#allocation18_spill]] %s2486_s2 }
   0x3   :  { %2503 = sst [smem:[#allocation19_spill]] %s2487_s3 }
   0x4   :  { %2504 = sst [smem:[#allocation20_spill]] %s2488_s4 }
   0x5   :  { %9 = vsyncpa [#allocation4], 0 }
   0x6   :  { %11 = vsyncpa [#allocation4 + $0x1], 0 }
   0x7   :  { %12 = vsyncpa [#allocation7], 0 }
   0x8   :  { %13 = vsyncpa [#allocation5], 0 }
   0x9   :  { %15 = vsyncpa [#allocation5 + $0x1], 0  ;;  %s1928_s15 = smov 0   ;;  %s1930_s16 = smov 0  }
   0xa   :  { %s1932_s17 = smov 0   ;;  %s1934_s18 = smov 0  }
   0xb   :  { %s1936_s19 = smov 0   ;;  %s1938_s20 = smov 0  }
   0xc   :  { %s1940_s21 = smov 0   ;;  %s1942_s22 = smov 0  }
   0xd   :  { %s1944_s23 = smov 0   ;;  %s1946_s24 = smov 0  }
   0xe   :  { %s1948_s25 = smov 0  }
   0xf LB: > { %2505 = sst [smem:[#allocation12_spill]] %s1851_s15  ;;  %s1101_s26 = sadd.s32 4294967295, %s1891_s25   ;;  %s1891_s25 = sphi %s1948_s25, %s21_s25   ;;  %s1887_s24 = sphi %s1946_s24, %s2543_s24   ;;  %s1883_s23 = sphi %s1944_s23, %s2542_s23   ;;  %s1879_s22 = sphi %s1942_s22, %s2541_s22   ;;  %s1875_s21 = sphi %s1940_s21, %s2540_s21   ;;  %s1871_s20 = sphi %s1938_s20, %s2539_s20   ;;  %s1867_s19 = sphi %s1936_s19, %s2538_s19   ;;  %s1863_s18 = sphi %s1934_s18, %s2537_s18   ;;  %s1859_s17 = sphi %s1932_s17, %s2536_s17   ;;  %s1855_s16 = sphi %s1930_s16, %s2535_s16   ;;  %s1851_s15 = sphi %s1928_s15, %s2534_s15  }
  0x10   : > { %2506 = sst [smem:[#allocation13_spill]] %s1875_s21  ;;  %s1102_s27 = sadd.s32 4294967294, %s1891_s25  }
  0x11   : > { %p55_p0 = scmp.ne.s32.totalorder %s1867_s19, %s1863_s18  ;;  %p1984_p1 = scmp.eq.s32.totalorder %s1101_s26, 0 }
  0x12   : > { %p146_p2 = scmp.ne.s32.totalorder %s1859_s17, %s1855_s16  ;;  %p147_p3 = scmp.eq.s32.totalorder %s1101_s26, 5 }
  0x13   : > { %s2507_s28 = scalar_select %p1984_p1, 1, 0 }
  0x14   : > { %p1992_p4 = por %p1984_p1, %p55_p0  ;;  %p152_p5 = scmp.ne.s32.totalorder %s1855_s16, %s1851_s15 }
  0x15   : > { %p1998_p6 = por %p147_p3, %p146_p2  ;;  %p153_p7 = scmp.eq.s32.totalorder %s1102_s27, 5 }
  0x16   : > { %s2508_s29 = scalar_select %p1992_p4, 1, 0 }
  0x17   : > { %s2509_s30 = scalar_select %p1998_p6, 1, 0 }
  0x18   : > { %p1103_p8 = scmp.ge.s32.totalorder %s1891_s25, 1  ;;  %p160_p9 = scmp.lt.s32.totalorder %s1891_s25, 7 }
  0x19   : > { %2510 = sst [smem:[#allocation14_spill]] %s2509_s30  ;;  %p2004_p10 = por %p153_p7, %p152_p5 }
  0x1a   : > { %p2008_p11 = pnand %p1103_p8, %p160_p9  ;;  %s1893_s7 = smov [#allocation6]  }
  0x1b   : > { %s2511_s5 = scalar_select %p2004_p10, 1, 0 }
  0x1c   : > { %s2513_s6 = scalar_select %p2008_p11, 1, 0 }
  0x1d   : > { %2512 = sst [smem:[#allocation15_spill]] %s2511_s5  ;;  %s172_s8 = sshll.u32 %s1893_s7, 4  ;;  %s173_s8 = int_to_ptr.vmem [resolvable:$true] %s172_s8 }
  0x1e   : > { %p1586_p12 = pneg %p2008_p11  ;;  %s2515_s1 = sld [smem:[#allocation17_spill]] }
  0x20   : > { %p2016_p13 = pnand %p1586_p12, %p1984_p1 }
  0x22   : > { %p1709_p2 = pneg %p2016_p13 }
  0x24   : > { %s1707_s12 = scalar_lea.hbm %s2515_s1, 6144 }
  0x25   : > { %p1708_p0 = scmp.ne.s32.totalorder %s2515_s1, %s1707_s12  ;;  %p1714_p7 = scmp.lt.u32.totalorder %s1707_s12, %s2515_s1 }
  0x27   : > { %p1710_p3 = pnand %p1709_p2, %p1708_p0 }
  0x29   : > { %p1711_p5 = pneg %p1710_p3 }
  0x2b   : > { %p1716_p8 = pnand %p1714_p7, %p1711_p5 }
  0x2d   : > { %1719 = shalt.err (!%p1716_p8)
}
  0x2e   : > { %s1720_s27 = scalar_lea.vmem %s173_s8, 6144  ;;  %p1728_p6 = scmp.lt.s32.totalorder %s173_s8, %s173_s8 }
  0x2f   : > { %p1721_p9 = scmp.ne.s32.totalorder %s173_s8, %s1720_s27  ;;  %p1729_p1 = scmp.lt.s32.totalorder %s1720_s27, %s1720_s27 }
  0x31   : > { %p1723_p12 = pnand %p1721_p9, %p1709_p2  ;;  %p1730_p4 = por %p1729_p1, %p1728_p6 }
  0x33   : > { %p1724_p10 = pneg %p1723_p12 }
  0x35   : > { %p1731_p11 = pnand %p1730_p4, %p1724_p10 }
  0x37   : > { %1734 = shalt.err (!%p1731_p11)
}
  0x38   : > { %s1894_s7 = smov 128   ;;  %s1895_s10 = smov 8  }
  0x39   : > { %1589 = dma.hbm_to_vmem [thread:$0]  (!%p2016_p13), %s2515_s1, 6144, %s173_s8, [#allocation7], %s1894_s7, %s1894_s7, %s1895_s10  }
  0x3a   : > { %s30_s13 = sadd.s32 1, %s1883_s23  ;;  %s33_s14 = sadd.s32 1, %s1887_s24 }
  0x3b   : > { %p31_p1 = scmp.ge.s32.totalorder %s30_s13, 3  ;;  %s42_s18 = sadd.s32 1, %s1871_s20 }
  0x3c   : > { %p49_p4 = scmp.ne.s32.totalorder %s1871_s20, %s1867_s19  ;;  %p50_p6 = scmp.eq.s32.totalorder %s1891_s25, 0 }
  0x3d   : > { %s2545_s13 = smov (%p31_p1, %s30_s13), 0  ;;  %s2547_s14 = smov (!%p31_p1, %s33_s14), %s1887_s24 }
  0x3e   : > { %2516 = sst [smem:[#allocation16_spill]] %s2545_s13  ;;  %s38_s9 = ssub.s32 %s1883_s23, %s2545_s13 }
  0x3f   : > { %p2047_p10 = por %p50_p6, %p49_p4  ;;  %p35_p11 = scmp.ge.s32.totalorder %s2547_s14, 2 }
  0x40   : > { %s136_s8 = sadd.s32 1, %s1859_s17  ;;  %p1599_p13 = scmp.lt.s32.totalorder %s1891_s25, 6 }
  0x41   : > { %s189_s27 = sand.u32 1, %s1871_s20   ;;  %s2549_s14 = smov (%p35_p11, %s2547_s14), 0 }
  0x42   : > { %s1106_s7 = sshll.u32 %s189_s27, 3  ;;  %s37_s10 = ssub.s32 %s1887_s24, %s2549_s14 }
  0x43   : > { %s39_s11 = sor.u32 %s38_s9, %s37_s10  ;;  %p134_p0 = scmp.eq.s32.totalorder %s37_s10, 0 }
  0x44   : > { %p40_p2 = scmp.eq.s32.totalorder %s39_s11, 0  ;;  %s1577_s12 = smul.u32 3, %s1887_s24 }
  0x45   : > { %s2060_s1 = scalar_select %p134_p0, %s1859_s17, %s136_s8  }
  0x46   : > { %s2063_s13 = scalar_select %p40_p2, %s1871_s20, %s42_s18  }
  0x47   : > { %s198_s5 = sadd.s32 %s1883_s23, %s1577_s12  ;;  %s193_s15 = scalar_lea.vmem [#allocation3], %s1106_s7 }
  0x48   : > { %s202_s4 = sshll.u32 %s193_s15, 4  ;;  %s1107_s30 = sshll.u32 %s198_s5, 7  ;;  %s2066_s4 = int_to_ptr.vmem [resolvable:$true] %s202_s4 }
  0x49   : > { %s2071_s2 = scalar_lea.hbm %s2484_s0, %s1107_s30  ;;  %p2077_p3 = pnand %p1599_p13, %p2047_p10 }
  0x4a   : > { %s190_s15 = scalar_lea.sflag [#allocation4], %s189_s27  ;;  %s1735_s5 = scalar_lea.hbm %s2071_s2, 128 }
  0x4b   : > { %p1736_p5 = scmp.ne.s32.totalorder %s2071_s2, %s1735_s5  ;;  %p1737_p7 = pneg %p2077_p3 }
  0x4c   : > { %s1740_s30 = scalar_lea.hbm %s2484_s0, 768  ;;  %p1741_p12 = scmp.lt.u32.totalorder %s2071_s2, %s2484_s0 }
  0x4d   : > { %p1738_p8 = pnand %p1737_p7, %p1736_p5  ;;  %p1742_p1 = scmp.lt.u32.totalorder %s1740_s30, %s1735_s5 }
  0x4e   : > { %p1744_p6 = scmp.lt.u32.totalorder %s1735_s5, %s2071_s2 }
  0x4f   : > { %p1739_p9 = pneg %p1738_p8  ;;  %p1743_p4 = por %p1742_p1, %p1741_p12 }
  0x51   : > { %p1745_p10 = por %p1744_p6, %p1743_p4 }
  0x53   : > { %p1746_p11 = pnand %p1745_p10, %p1739_p9 }
  0x55   : > { %1749 = shalt.err (!%p1746_p11)
}
  0x56   : > { %s1750_s8 = scalar_lea.vmem %s2066_s4, 128  ;;  %s1896_s27 = smov [#allocation3]  }
  0x57   : > { %p1751_p13 = scmp.ne.s32.totalorder %s2066_s4, %s1750_s8  ;;  %s1755_s7 = sshll.u32 %s1896_s27, 4  ;;  %s1756_s7 = int_to_ptr.vmem [resolvable:$false] %s1755_s7 }
  0x58   : > { %s1757_s10 = scalar_lea.vmem %s1756_s7, 256  ;;  %p1758_p5 = scmp.lt.s32.totalorder %s2066_s4, %s1756_s7 }
  0x59   : > { %p1753_p0 = pnand %p1751_p13, %p1737_p7  ;;  %p1759_p8 = scmp.lt.s32.totalorder %s1757_s10, %s1750_s8 }
  0x5b   : > { %p1754_p2 = pneg %p1753_p0  ;;  %p1760_p12 = por %p1759_p8, %p1758_p5 }
  0x5d   : > { %p1761_p1 = pnand %p1760_p12, %p1754_p2 }
  0x5f   : > { %1764 = shalt.err (!%p1761_p1)
}
  0x60   : > { %1593 = dma.hbm_to_vmem [thread:$0]  (!%p2077_p3), %s2071_s2, 128, %s2066_s4, %s190_s15  }
  0x61   : > { %p2519_p9 = scmp.ne.s32.totalorder %s2513_s6, 0 }
  0x62   : > { %s220_s11 = sand.u32 (!%p2519_p9), 1, %s1867_s19   ;;  %p2520_p7 = scmp.ne.s32.totalorder (!%p2519_p9), %s2508_s29, 0 }
  0x63   : > { %218 = sbr.rel (%p2519_p9) target bundleno = 677 (0x2a5), region = 36  ;;  %s1109_s12 = sshll.u32 (!%p2519_p9), %s220_s11, 3 }
  0x64   : > { %s221_s5 = scalar_lea.sflag (!%p2519_p9), [#allocation4], %s220_s11  ;;  %s224_s3 = scalar_lea.vmem (!%p2519_p9), [#allocation3], %s1109_s12 }
  0x6a   : > { %1838 = dma.done.wait (%p2520_p7), %s221_s5, 128  }
  0x6b   : > { %1840 = vsyncadd (%p2520_p7), %s221_s5, 4294967168  ;;  %p2521_p4 = scmp.ne.s32.totalorder %s2507_s28, 0 }
  0x6d   : > { %1842 = dma.done.wait (%p2521_p4), [#allocation7], 6144  }
  0x6e   : > { %1844 = vsyncadd (%p2521_p4), [#allocation7], 4294961152  ;;  %s254_s2 = sand.u32 1, %s1855_s16   ;;  %p257_p3 = scmp.lt.s32.totalorder %s1879_s22, 1 }
  0x6f   : > { %s2121_s4 = sshll.u32 %s254_s2, 3  ;;  %s2522_s21 = sld [smem:[#allocation18_spill]] }
  0x70   : > { %s258_s6 = scalar_select %p257_p3, %s1879_s22, 1 }
  0x71   : > { %s256_s9 = scalar_lea.vmem [#allocation8], %s2121_s4  ;;  %s2523_s28 = sld [smem:[#allocation13_spill]] }
  0x72   : > { %s1112_s18 = sshll.u32 %s258_s6, 3 }
  0x75   : > { %s2127_s30 = scalar_lea.vmem %s2522_s21, %s1112_s18 }
  0x77   : > { %p1113_p6 = scmp.ne.s32.totalorder %s2523_s28, 0 }
  0x78   : > { %v1897_v0 = vmov (!%p1113_p6), 0.0  }
  0x79   : > { %264 = sbr.rel (%p1113_p6) target bundleno = 128 (0x80), region = 48  ;;  %265 = vst [vmem:[#allocation2] sm:$0xff] (!%p1113_p6), %v1897_v0 }
  0x80 PF: > { %s2524_s26 = sld [smem:[#allocation13_spill]]  ;;  %v1898_v1 = vmov 0.0|0.0   ;;  %v2134_v2 = vld [vmem:[%s224_s3] sm:$0xff]  ;;  %vm1899_vm0 = vmmov 0   ;;  %v1900_v6 = vmov 0.0  }
  0x81   : > { %1433 = vmatprep.subr.bf16.mxu0 %v1898_v1  ;;  %1457 = vmatprep.subr.bf16.mxu1 %v1898_v1  ;;  %v2164_v25 = vand.u32 4294901760, %v2134_v2 }
  0x82   : > { %1255 = vmatprep.mubr.msk.f32.mxu0 %vm1899_vm0, %v1900_v6  ;;  %1290 = vmatprep.mubr.msk.f32.mxu1 %vm1899_vm0, %v1900_v6 }
  0x86   : > { %s1114_s8 = sshll.u32 %s2524_s26, 7  ;;  %p1115_p10 = scmp.ne.s32.totalorder %s2524_s26, 2 }
  0x87   : > { %s2136_s27 = scalar_lea.vmem [#allocation6], %s1114_s8  ;;  %s2525_s11 = sld [smem:[#allocation19_spill]] (!%p1115_p10) }
  0x88   : > { %v269_v3 = vld [vmem:[%s2136_s27] sm:$0xff]  ;;  %v270_v4 = vld [vmem:[%s2136_s27 + $0x8] sm:$0xff]  ;;  %v271_v5 = vld [vmem:[%s2136_s27 + $0x10] sm:$0xff] }
  0x89   : > { %v287_v7 = vand.u32 4294901760, %v269_v3  ;;  %v290_v8 = vand.u32 4294901760, %v270_v4  ;;  %v272_v9 = vld [vmem:[%s2136_s27 + $0x18] sm:$0xff]  ;;  %v293_v10 = vand.u32 4294901760, %v271_v5  ;;  %v273_v11 = vld [vmem:[%s2136_s27 + $0x20] sm:$0xff]  ;;  %v274_v12 = vld [vmem:[%s2136_s27 + $0x28] sm:$0xff] }
  0x8a   : > { %v296_v13 = vand.u32 4294901760, %v272_v9  ;;  %v299_v14 = vand.u32 4294901760, %v273_v11  ;;  %v302_v15 = vand.u32 4294901760, %v274_v12  ;;  %v275_v16 = vld [vmem:[%s2136_s27 + $0x30] sm:$0xff]  ;;  %v276_v21 = vld [vmem:[%s2136_s27 + $0x38] sm:$0xff]  ;;  %v277_v22 = vld [vmem:[%s2136_s27 + $0x40] sm:$0xff] }
  0x8b   : > { %v2149_v17 = vpack.c.bf16 %v290_v8, %v287_v7  ;;  %v2151_v18 = vsub.f32 %v269_v3, %v287_v7  ;;  %v2153_v19 = vsub.f32 %v270_v4, %v290_v8  ;;  %v2155_v20 = vsub.f32 %v271_v5, %v293_v10  ;;  %v278_v30 = vld [vmem:[%s2136_s27 + $0x48] sm:$0xff]  ;;  %v279_v43 = vld [vmem:[%s2136_s27 + $0x50] sm:$0xff]  ;;  %v280_v44 = vld [vmem:[%s2136_s27 + $0x58] sm:$0xff] }
  0x8c   : > { %v2159_v23 = vpack.c.bf16 %v296_v13, %v293_v10  ;;  %v2161_v24 = vsub.f32 %v272_v9, %v296_v13  ;;  %v2167_v26 = vsub.f32 %v273_v11, %v299_v14  ;;  %v305_v29 = vand.u32 4294901760, %v275_v16  ;;  %v281_v53 = vld [vmem:[%s2136_s27 + $0x60] sm:$0xff]  ;;  %v282_v62 = vld [vmem:[%s2136_s27 + $0x68] sm:$0xff]  ;;  %v283_v5 = vld [vmem:[%s2136_s27 + $0x70] sm:$0xff] }
  0x8d   : > { %1435 = vmatpush3.bf16.msra.mxu0 %v2149_v17  ;;  %v380_v27 = vand.u32 4294901760, %v2151_v18  ;;  %v387_v28 = vand.u32 4294901760, %v2153_v19  ;;  %v308_v31 = vand.u32 4294901760, %v276_v21  ;;  %v394_v32 = vand.u32 4294901760, %v2155_v20  ;;  %v284_v11 = vld [vmem:[%s2136_s27 + $0x78] sm:$0xff] }
  0x8e   : > { %1436 = vmatprep.subr.bf16.mxu0 %v1898_v1  ;;  %v401_v33 = vand.u32 4294901760, %v2161_v24  ;;  %v311_v34 = vand.u32 4294901760, %v277_v22  ;;  %v2175_v35 = vsub.f32 %v274_v12, %v302_v15  ;;  %v2183_v38 = vsub.f32 %v275_v16, %v305_v29 }
  0x8f   : > { %v381_v36 = vsub.f32 %v2151_v18, %v380_v27  ;;  %v388_v37 = vsub.f32 %v2153_v19, %v387_v28  ;;  %v2185_v39 = vsub.f32 %v276_v21, %v308_v31  ;;  %v395_v40 = vsub.f32 %v2155_v20, %v394_v32 }
  0x90   : > { %v402_v41 = vsub.f32 %v2161_v24, %v401_v33  ;;  %v314_v42 = vand.u32 4294901760, %v278_v30  ;;  %v2196_v45 = vpack.c.bf16 %v302_v15, %v299_v14  ;;  %v2198_v48 = vpack.c.bf16 %v308_v31, %v305_v29 }
  0x91   : > { %1438 = vmatpush3.bf16.msra.mxu0 %v2159_v23  ;;  %v382_v46 = vand.u32 4294901760, %v381_v36  ;;  %v389_v47 = vand.u32 4294901760, %v388_v37  ;;  %v396_v49 = vand.u32 4294901760, %v395_v40  ;;  %v2201_v51 = vsub.f32 %v277_v22, %v311_v34 }
  0x92   : > { %1439 = vmatprep.subr.bf16.mxu0 %v1898_v1  ;;  %v403_v50 = vand.u32 4294901760, %v402_v41  ;;  %v408_v52 = vand.u32 4294901760, %v2167_v26  ;;  %v415_v55 = vand.u32 4294901760, %v2175_v35  ;;  %v317_v56 = vand.u32 4294901760, %v279_v43 }
  0x93   : > { %v1458_v54 = vpack.c.bf16 %v389_v47, %v382_v46  ;;  %v320_v57 = vand.u32 4294901760, %v280_v44  ;;  %v2206_v58 = vsub.f32 %v278_v30, %v314_v42  ;;  %v422_v60 = vand.u32 4294901760, %v2183_v38 }
  0x94   : > { %v409_v59 = vsub.f32 %v2167_v26, %v408_v52  ;;  %v429_v61 = vand.u32 4294901760, %v2185_v39  ;;  %v1461_v63 = vpack.c.bf16 %v403_v50, %v396_v49  ;;  %v2215_v0 = vpack.c.bf16 %v314_v42, %v311_v34 }
  0x95   : > { %1441 = vmatpush3.bf16.msra.mxu0 %v2196_v45  ;;  %1459 = vmatpush3.bf16.msra.mxu1 %v1458_v54  ;;  %v416_v3 = vsub.f32 %v2175_v35, %v415_v55  ;;  %v323_v4 = vand.u32 4294901760, %v281_v53  ;;  %v2223_v8 = vsub.f32 %v279_v43, %v317_v56  ;;  %v423_v9 = vsub.f32 %v2183_v38, %v422_v60 }
  0x96   : > { %1442 = vmatprep.subr.bf16.mxu0 %v1898_v1  ;;  %1460 = vmatprep.subr.bf16.mxu1 %v1898_v1  ;;  %v410_v7 = vand.u32 4294901760, %v409_v59  ;;  %v430_v10 = vsub.f32 %v2185_v39, %v429_v61  ;;  %v2232_v13 = vsub.f32 %v280_v44, %v320_v57  ;;  %v326_v14 = vand.u32 4294901760, %v282_v62 }
  0x97   : > { %v417_v12 = vand.u32 4294901760, %v416_v3  ;;  %v436_v15 = vand.u32 4294901760, %v2201_v51  ;;  %v424_v16 = vand.u32 4294901760, %v423_v9  ;;  %v443_v22 = vand.u32 4294901760, %v2206_v58 }
  0x98   : > { %v431_v21 = vand.u32 4294901760, %v430_v10  ;;  %v329_v29 = vand.u32 4294901760, %v283_v5  ;;  %v2237_v31 = vsub.f32 %v281_v53, %v323_v4  ;;  %v2239_v34 = vsub.f32 %v282_v62, %v326_v14 }
  0x99   : > { %1444 = vmatpush3.bf16.msra.mxu0 %v2198_v48  ;;  %1462 = vmatpush3.bf16.msra.mxu1 %v1461_v63  ;;  %v1464_v30 = vpack.c.bf16 %v417_v12, %v410_v7  ;;  %v332_v36 = vand.u32 4294901760, %v284_v11  ;;  %v437_v37 = vsub.f32 %v2201_v51, %v436_v15  ;;  %v444_v40 = vsub.f32 %v2206_v58, %v443_v22 }
  0x9a   : > { %1445 = vmatprep.subr.bf16.mxu0 %v1898_v1  ;;  %1463 = vmatprep.subr.bf16.mxu1 %v1898_v1  ;;  %v450_v41 = vand.u32 4294901760, %v2223_v8  ;;  %v2250_v42 = vpack.c.bf16 %v320_v57, %v317_v56  ;;  %v1467_v43 = vpack.c.bf16 %v431_v21, %v424_v16  ;;  %v457_v44 = vand.u32 4294901760, %v2232_v13 }
  0x9b   : > { %v2255_v46 = vsub.f32 %v2134_v2, %v2164_v25  ;;  %v438_v47 = vand.u32 4294901760, %v437_v37  ;;  %v445_v49 = vand.u32 4294901760, %v444_v40  ;;  %v2257_v50 = vsub.f32 %v283_v5, %v329_v29 }
  0x9c   : > { %v451_v53 = vsub.f32 %v2223_v8, %v450_v41  ;;  %v2263_v54 = vsub.f32 %v284_v11, %v332_v36  ;;  %v458_v56 = vsub.f32 %v2232_v13, %v457_v44  ;;  %v464_v2 = vand.u32 4294901760, %v2237_v31 }
  0x9d   : > { %1447 = vmatpush3.bf16.msra.mxu0 %v2215_v0  ;;  %1465 = vmatpush3.bf16.msra.mxu1 %v1464_v30  ;;  %v471_v57 = vand.u32 4294901760, %v2239_v34  ;;  %v2272_v59 = vpack.c.bf16 %v326_v14, %v323_v4  ;;  %v1470_v62 = vpack.c.bf16 %v445_v49, %v438_v47  ;;  %v369_v3 = vand.u32 4294901760, %v2255_v46 }
  0x9e   : > { %1448 = vmatprep.subr.bf16.mxu0 %v1898_v1  ;;  %1466 = vmatprep.subr.bf16.mxu1 %v1898_v1  ;;  %v452_v63 = vand.u32 4294901760, %v451_v53  ;;  %v478_v5 = vand.u32 4294901760, %v2257_v50  ;;  %v459_v7 = vand.u32 4294901760, %v458_v56  ;;  %v465_v9 = vsub.f32 %v2237_v31, %v464_v2 }
  0x9f   : > { %v472_v10 = vsub.f32 %v2239_v34, %v471_v57  ;;  %v485_v4 = vand.u32 4294901760, %v2263_v54  ;;  %v2286_v11 = vpack.c.bf16 %v332_v36, %v329_v29  ;;  %v370_v12 = vsub.f32 %v2255_v46, %v369_v3 }
  0xa0   : > { %v479_v14 = vsub.f32 %v2257_v50, %v478_v5  ;;  %v1473_v16 = vpack.c.bf16 %v459_v7, %v452_v63  ;;  %v466_v21 = vand.u32 4294901760, %v465_v9  ;;  %v1482_v40 = vpack.c.bf16 %v2153_v19, %v2151_v18 }
  0xa1   : > { %1450 = vmatpush3.bf16.msra.mxu0 %v2250_v42  ;;  %1468 = vmatpush3.bf16.msra.mxu1 %v1467_v43  ;;  %v473_v30 = vand.u32 4294901760, %v472_v10  ;;  %v486_v37 = vsub.f32 %v2263_v54, %v485_v4  ;;  %v371_v29 = vand.u32 4294901760, %v370_v12  ;;  %v1485_v53 = vpack.c.bf16 %v2161_v24, %v2155_v20 }
  0xa2   : > { %1451 = vmatprep.subr.bf16.mxu0 %v1898_v1  ;;  %1469 = vmatprep.subr.bf16.mxu1 %v1898_v1  ;;  %v480_v43 = vand.u32 4294901760, %v479_v14  ;;  %v1488_v56 = vpack.c.bf16 %v2175_v35, %v2167_v26  ;;  %v1494_v63 = vpack.c.bf16 %v2206_v58, %v2201_v51  ;;  %v1497_v7 = vpack.c.bf16 %v2232_v13, %v2223_v8  ;;  %v285_v58 = vld [vmem:[#allocation2] sm:$0xff] }
  0xa3   : > { %v1476_v36 = vpack.c.bf16 %v473_v30, %v466_v21  ;;  %v487_v47 = vand.u32 4294901760, %v486_v37  ;;  %v1500_v9 = vpack.c.bf16 %v2239_v34, %v2237_v31  ;;  %v1503_v10 = vpack.c.bf16 %v2263_v54, %v2257_v50 }
  0xa4   : > { %v1530_v12 = vpack.c.bf16 %v387_v28, %v380_v27  ;;  %v1533_v14 = vpack.c.bf16 %v401_v33, %v394_v32  ;;  %v1536_v18 = vpack.c.bf16 %v415_v55, %v408_v52  ;;  %v1539_v19 = vpack.c.bf16 %v429_v61, %v422_v60 }
  0xa5   : > { %1453 = vmatpush3.bf16.msra.mxu0 %v2272_v59  ;;  %1471 = vmatpush3.bf16.msra.mxu1 %v1470_v62  ;;  %v1479_v49 = vpack.c.bf16 %v487_v47, %v480_v43  ;;  %v1491_v62 = vpack.c.bf16 %v2185_v39, %v2183_v38  ;;  %v1548_v20 = vpack.c.bf16 %v471_v57, %v464_v2  ;;  %v1901_v8 = vmov (!%p1115_p10), 0  }
  0xa6   : > { %1454 = vmatprep.subr.bf16.mxu0 %v1898_v1  ;;  %1472 = vmatprep.subr.bf16.mxu1 %v1898_v1 }
  0xa7   : > { %1698 = vset.pattern.permute.xlu0 (!%p1115_p10), %v1901_v8 }
  0xa9   : > { %1456 = vmatpush3.bf16.msra.mxu0 %v2286_v11  ;;  %1474 = vmatpush3.bf16.msra.mxu1 %v1473_v16 }
  0xaa   : > { %1475 = vmatprep.subr.bf16.mxu1 %v1898_v1  ;;  %1481 = vmatprep.subr.bf16.mxu0 %v1898_v1 }
  0xac   : > { %1256 = vmatmul.mubr.f32.vlgmr.msra.gmra.mrb[0].mxu0 %v371_v29 }
  0xad   : > { %1477 = vmatpush3.bf16.msra.mxu1 %v1476_v36  ;;  %1483 = vmatpush3.bf16.msra.mxu0 %v1482_v40 }
  0xae   : > { %1478 = vmatprep.subr.bf16.mxu1 %v1898_v1  ;;  %1484 = vmatprep.subr.bf16.mxu0 %v1898_v1 }
  0xaf   : > { %1325 = vmatprep.mubr.msk.f32.mxu0 %vm1899_vm0, %v1900_v6 }
  0xb1   : > { %1480 = vmatpush3.bf16.msra.mxu1 %v1479_v49  ;;  %1486 = vmatpush3.bf16.msra.mxu0 %v1485_v53 }
  0xb2   : > { %1487 = vmatprep.subr.bf16.mxu0 %v1898_v1  ;;  %1505 = vmatprep.subr.bf16.mxu1 %v1898_v1 }
  0xb4   : > { %1291 = vmatmul.mubr.f32.vlgmr.msra.gmra.mrb[0].mxu1 %v2164_v25 }
  0xb5   : > { %1489 = vmatpush3.bf16.msra.mxu0 %v1488_v56  ;;  %1507 = vmatpush3.bf16.msra.mxu1 %v2149_v17 }
  0xb6   : > { %1490 = vmatprep.subr.bf16.mxu0 %v1898_v1  ;;  %1508 = vmatprep.subr.bf16.mxu1 %v1898_v1 }
  0xb7   : > { %1360 = vmatprep.mubr.msk.f32.mxu1 %vm1899_vm0, %v1900_v6 }
  0xb9   : > { %1492 = vmatpush3.bf16.msra.mxu0 %v1491_v62  ;;  %1510 = vmatpush3.bf16.msra.mxu1 %v2159_v23 }
  0xba   : > { %1493 = vmatprep.subr.bf16.mxu0 %v1898_v1  ;;  %1511 = vmatprep.subr.bf16.mxu1 %v1898_v1 }
  0xbd   : > { %1495 = vmatpush3.bf16.msra.mxu0 %v1494_v63  ;;  %1513 = vmatpush3.bf16.msra.mxu1 %v2196_v45 }
  0xbe   : > { %1496 = vmatprep.subr.bf16.mxu0 %v1898_v1  ;;  %1514 = vmatprep.subr.bf16.mxu1 %v1898_v1 }
  0xc1   : > { %1498 = vmatpush3.bf16.msra.mxu0 %v1497_v7  ;;  %1516 = vmatpush3.bf16.msra.mxu1 %v2198_v48 }
  0xc2   : > { %1499 = vmatprep.subr.bf16.mxu0 %v1898_v1  ;;  %1517 = vmatprep.subr.bf16.mxu1 %v1898_v1 }
  0xc5   : > { %1501 = vmatpush3.bf16.msra.mxu0 %v1500_v9  ;;  %1519 = vmatpush3.bf16.msra.mxu1 %v2215_v0 }
  0xc6   : > { %1502 = vmatprep.subr.bf16.mxu0 %v1898_v1  ;;  %1520 = vmatprep.subr.bf16.mxu1 %v1898_v1 }
  0xc9   : > { %1504 = vmatpush3.bf16.msra.mxu0 %v1503_v10  ;;  %1522 = vmatpush3.bf16.msra.mxu1 %v2250_v42 }
  0xca   : > { %1523 = vmatprep.subr.bf16.mxu1 %v1898_v1  ;;  %1529 = vmatprep.subr.bf16.mxu0 %v1898_v1 }
  0xcc   : > { %1326 = vmatmul.mubr.f32.vlgmr.msra.gmra.mrb[2].mxu0 %v2255_v46 }
  0xcd   : > { %1525 = vmatpush3.bf16.msra.mxu1 %v2272_v59  ;;  %1531 = vmatpush3.bf16.msra.mxu0 %v1530_v12 }
  0xce   : > { %1526 = vmatprep.subr.bf16.mxu1 %v1898_v1  ;;  %1532 = vmatprep.subr.bf16.mxu0 %v1898_v1 }
  0xcf   : > { %1395 = vmatprep.mubr.msk.f32.mxu0 %vm1899_vm0, %v1900_v6 }
  0xd1   : > { %1528 = vmatpush3.bf16.msra.mxu1 %v2286_v11  ;;  %1534 = vmatpush3.bf16.msra.mxu0 %v1533_v14 }
  0xd2   : > { %1535 = vmatprep.subr.bf16.mxu0 %v1898_v1  ;;  %1553 = vmatprep.subr.bf16.mxu1 %v1898_v1 }
  0xd4   : > { %1361 = vmatmul.mubr.f32.vlgmr.msra.gmra.mrb[2].mxu1 %v369_v3 }
  0xd5   : > { %1537 = vmatpush3.bf16.msra.mxu0 %v1536_v18  ;;  %1555 = vmatpush3.bf16.msra.mxu1 %v2149_v17  ;;  %v1542_v17 = vpack.c.bf16 %v443_v22, %v436_v15  ;;  %v1116_v15 = vld [vmem:[%s2525_s11] ss:$0 sm:$0xff] (!%p1115_p10) }
  0xd6   : > { %1538 = vmatprep.subr.bf16.mxu0 %v1898_v1  ;;  %1556 = vmatprep.subr.bf16.mxu1 %v1898_v1 }
  0xd7   : > { %1430 = vmatprep.mubr.msk.f32.mxu1 %vm1899_vm0, %v1900_v6  ;;  %v1545_v6 = vpack.c.bf16 %v457_v44, %v450_v41  ;;  %v966_v44 = vlaneseq (!%p1115_p10) }
  0xd9   : > { %1540 = vmatpush3.bf16.msra.mxu0 %v1539_v19  ;;  %1558 = vmatpush3.bf16.msra.mxu1 %v2159_v23  ;;  %v1551_v23 = vpack.c.bf16 %v485_v4, %v478_v5  ;;  %v967_v46 = vand.u32 (!%p1115_p10), 127, %v966_v44 }
  0xda   : > { %1541 = vmatprep.subr.bf16.mxu0 %v1898_v1  ;;  %1559 = vmatprep.subr.bf16.mxu1 %v1898_v1 }
  0xdb   : > { %vm968_vm1 = vcmp.lt.s32.totalorder (!%p1115_p10), %v967_v46, 3 }
  0xdd   : > { %1543 = vmatpush3.bf16.msra.mxu0 %v1542_v17  ;;  %1561 = vmatpush3.bf16.msra.mxu1 %v2196_v45 }
  0xde   : > { %1544 = vmatprep.subr.bf16.mxu0 %v1898_v1  ;;  %1562 = vmatprep.subr.bf16.mxu1 %v1898_v1 }
  0xe1   : > { %1546 = vmatpush3.bf16.msra.mxu0 %v1545_v6  ;;  %1564 = vmatpush3.bf16.msra.mxu1 %v2198_v48 }
  0xe2   : > { %1547 = vmatprep.subr.bf16.mxu0 %v1898_v1  ;;  %1565 = vmatprep.subr.bf16.mxu1 %v1898_v1 }
  0xe5   : > { %1549 = vmatpush3.bf16.msra.mxu0 %v1548_v20  ;;  %1567 = vmatpush3.bf16.msra.mxu1 %v2215_v0 }
  0xe6   : > { %1550 = vmatprep.subr.bf16.mxu0 %v1898_v1  ;;  %1568 = vmatprep.subr.bf16.mxu1 %v1898_v1 }
  0xe9   : > { %1552 = vmatpush3.bf16.msra.mxu0 %v1551_v23  ;;  %1570 = vmatpush3.bf16.msra.mxu1 %v2250_v42 }
  0xea   : > { %1571 = vmatprep.subr.bf16.mxu1 %v1898_v1 }
  0xec   : > { %1396 = vmatmul.mubr.f32.vlgmr.msra.gmra.mrb[4].mxu0 %v2164_v25 }
  0xed   : > { %1573 = vmatpush3.bf16.msra.mxu1 %v2272_v59 }
  0xee   : > { %1574 = vmatprep.subr.bf16.mxu1 %v1898_v1 }
  0xf1   : > { %1576 = vmatpush3.bf16.msra.mxu1 %v2286_v11 }
  0xf4   : > { %1431 = vmatmul.mubr.f32.vlgmr.msra.gmra.mrb[4].mxu1 %v2164_v25  ;;  %v934_v25 = vld [vmem:[%s2127_s30] sm:$0xff] (!%p1115_p10) }
  0xf5   : > { %937 = vperm.xlu0 (!%p1115_p10), %1698, %v934_v25  }
 0x174   : > { %v938_v22 = vpop.permute.xlu0 (!%p1115_p10), %937 }
 0x17f   : > { %v373_v24 = vpop.f32.mrb[0].mxu0 }
 0x180   : > { %v1257_v26 = vpop.f32.mrb[1].mxu0 }
 0x187   : > { %v524_v27 = vpop.f32.mrb[0].mxu1 }
 0x188   : > { %v525_v28 = vadd.f32 %v524_v27, %v373_v24  ;;  %v1292_v32 = vpop.f32.mrb[1].mxu1 }
 0x19f   : > { %v628_v33 = vpop.f32.mrb[2].mxu0 }
 0x1a0   : > { %v629_v35 = vadd.f32 %v628_v33, %v525_v28  ;;  %v1327_v38 = vpop.f32.mrb[3].mxu0 }
 0x1a7   : > { %v717_v39 = vpop.f32.mrb[2].mxu1 }
 0x1a8   : > { %v718_v45 = vadd.f32 %v717_v39, %v629_v35  ;;  %v1362_v48 = vpop.f32.mrb[3].mxu1 }
 0x1bf   : > { %v836_v51 = vpop.f32.mrb[4].mxu0 }
 0x1c0   : > { %v837_v52 = vadd.f32 %v836_v51, %v718_v45  ;;  %v1397_v55 = vpop.f32.mrb[5].mxu0 }
 0x1c6   : > { %932 = sbr.rel (%p1115_p10) target bundleno = 650 (0x28a), region = 52 }
 0x1c7   : > { %v923_v1 = vpop.f32.mrb[4].mxu1 }
 0x1c8   : > { %v924_v60 = vadd.f32 %v923_v1, %v837_v52  ;;  %v1432_v61 = vpop.f32.mrb[5].mxu1 }
 0x1ca   : > { %v927_v0 = vadd.f32 %v924_v60, %v285_v58 }
 0x1cc   : > { %928 = vst [vmem:[#allocation2] sm:$0xff] %v927_v0 }
 0x1d3   : > { %v933_v13 = vld [vmem:[#allocation2] sm:$0xff] }
 0x1d4   : > { %v940_v31 = vmul.f32 %v938_v22, %v933_v13 }
 0x1d6   : > { %v948_v34 = vmul.f32 %v1116_v15, %v940_v31 }
 0x1d8   : > { %v963_v41 = vmul.f32 10.0, %v948_v34  ;;  %v949_v2 = vmul.f32 %v948_v34, %v948_v34  ;;  %v959_v30 = vmul.f32 0.5403023, %v948_v34 }
 0x1da   : > { %v964_v42 = vmul.f32 1.442695, %v963_v41  ;;  %v950_v57 = vsub.f32 1.0, %v949_v2 }
 0x1dc   : > { %1699 = vpow2.f32 %v964_v42  ;;  %v951_v59 = vmax.f32 %v950_v57, 0.0 }
 0x1de   : > { %1701 = vrsqrt.f32 %v951_v59  ;;  %vm954_vm2 = vcmp.eq.f32.partialorder %v951_v59, inf  ;;  %v957_v11 = vand.u32 2147483648, %v951_v59  ;;  %vm956_vm3 = vcmp.eq.f32.partialorder %v951_v59, 0.0 }
 0x1e6   : > { %v1700_v50 = vpop.eup %1699 }
 0x1e7   : > { %v969_v54 = vsel %vm968_vm1, %v1700_v50, 0.0 }
 0x1e8   : > { %970 = vadd.xlane.f32.xlu0 %v969_v54  ;;  %v1702_v3 = vpop.eup %1701 }
 0x1e9   : > { %v953_v5 = vmul.f32 %v1702_v3, %v951_v59 }
 0x1eb   : > { %v955_v4 = vsel %vm954_vm2, %v951_v59, %v953_v5 }
 0x1ec   : > { %v958_v16 = vsel %vm956_vm3, %v957_v11, %v955_v4 }
 0x1ed   : > { %v960_v21 = vmul.f32 0.84147096, %v958_v16 }
 0x1ef   : > { %v961_v37 = vsub.f32 %v959_v30, %v960_v21 }
 0x1f1   : > { %v962_v29 = vmul.f32 10.0, %v961_v37 }
 0x1f3   : > { %v972_v36 = vmul.f32 1.442695, %v962_v29 }
 0x1f5   : > { %1703 = vpow2.f32 %v972_v36 }
 0x1ff   : > { %v1704_v40 = vpop.eup %1703 }
 0x275   : > { %v971_v43 = vpop.xlane.xlu0 %970 }
 0x276   : > { %v974_v47 = vadd.f32 %v1704_v40, %v971_v43 }
 0x278   : > { %v975_v49 = vsub.f32 %v974_v47, %v1700_v50 }
 0x27a   : > { %1705 = vlog2.f32 %v975_v49 }
 0x284   : > { %v1706_v53 = vpop.eup %1705 }
 0x285   : > { %v977_v56 = vmul.f32 0.6931472, %v1706_v53 }
 0x287   : > { %v978_v62 = vsub.f32 %v962_v29, %v977_v56 }
 0x289   : > { %979 = vst [vmem:[%s256_s9] sm:$0xff] %v978_v62 }
 0x28a PF: > { %s2526_s12 = sld [smem:[#allocation14_spill]]  ;;  %s1118_s5 = sshll.u32 %s1879_s22, 7 }
 0x28b   : > { %s2527_s18 = sld [smem:[#allocation20_spill]]  ;;  %s994_s21 = sshll.u32 %s256_s9, 4  ;;  %s995_s21 = int_to_ptr.vmem [resolvable:$true] %s994_s21 }
 0x28c   : > { %s981_s30 = scalar_lea.sflag [#allocation5], %s254_s2  ;;  %s1765_s28 = scalar_lea.vmem %s995_s21, 128 }
 0x28d   : > { %p1766_p11 = scmp.ne.s32.totalorder %s995_s21, %s1765_s28  ;;  %s1902_s26 = smov [#allocation8]  }
 0x28e   : > { %s1769_s8 = sshll.u32 %s1902_s26, 4  ;;  %s1770_s8 = int_to_ptr.vmem [resolvable:$false] %s1769_s8 }
 0x28f   : > { %s1771_s27 = scalar_lea.vmem %s1770_s8, 256  ;;  %p1772_p5 = scmp.lt.s32.totalorder %s995_s21, %s1770_s8 }
 0x290   : > { %p2529_p13 = scmp.ne.s32.totalorder %s2526_s12, 0  ;;  %p1773_p8 = scmp.lt.s32.totalorder %s1771_s27, %s1765_s28 }
 0x291   : > { %s2528_s29 = smov %s2527_s18  ;;  %s2424_s15 = scalar_lea.hbm %s2527_s18, %s1118_s5 }
 0x292   : > { %p1767_p0 = pnand %p1766_p11, %p2529_p13  ;;  %p1774_p12 = por %p1773_p8, %p1772_p5 }
 0x294   : > { %p1768_p2 = pneg %p1767_p0 }
 0x296   : > { %p1775_p1 = pnand %p1774_p12, %p1768_p2 }
 0x298   : > { %1778 = shalt.err (!%p1775_p1)
}
 0x299   : > { %s1779_s22 = scalar_lea.hbm %s2424_s15, 128  ;;  %s1783_s9 = scalar_lea.hbm %s2528_s29, 256 }
 0x29a   : > { %p1780_p9 = scmp.ne.s32.totalorder %s2424_s15, %s1779_s22  ;;  %p1784_p3 = scmp.lt.u32.totalorder %s2424_s15, %s2528_s29 }
 0x29b   : > { %p1785_p6 = scmp.lt.u32.totalorder %s1783_s9, %s1779_s22  ;;  %p1787_p11 = scmp.lt.u32.totalorder %s1779_s22, %s2424_s15 }
 0x29c   : > { %p1781_p7 = pnand %p1780_p9, %p2529_p13 }
 0x29d   : > { %p1786_p10 = por %p1785_p6, %p1784_p3 }
 0x29e   : > { %p1782_p4 = pneg %p1781_p7 }
 0x29f   : > { %p1788_p0 = por %p1787_p11, %p1786_p10 }
 0x2a1   : > { %p1789_p2 = pnand %p1788_p0, %p1782_p4 }
 0x2a3   : > { %1792 = shalt.err (!%p1789_p2)
}
 0x2a4   : > { %1584 = dma.vmem_to_hbm [thread:$0]  (%p2529_p13), %s995_s21, 128, %s2424_s15, %s981_s30  }
 0x2a5 PF: > { %s2530_s11 = sld [smem:[#allocation12_spill]]  ;;  %s2531_s5 = sld [smem:[#allocation15_spill]] }
 0x2a6   : > { %p1601_p5 = scmp.ge.s32.totalorder %s1891_s25, 2 }
 0x2ab   : > { %s1006_s3 = sand.u32 1, %s2530_s11   ;;  %p2532_p8 = scmp.ne.s32.totalorder %s2531_s5, 0 }
 0x2ac   : > { %s1007_s6 = scalar_lea.sflag [#allocation5], %s1006_s3 }
 0x2ad   : > { %p1595_p12 = pnand %p1601_p5, %p2532_p8 }
 0x2af   : > { %1846 = dma.done.wait (!%p1595_p12), %s1007_s6, 128  }
 0x2b0   : > { %1848 = vsyncadd (!%p1595_p12), %s1007_s6, 4294967168  ;;  %s21_s25 = sadd.s32 1, %s1891_s25   ;;  %s2533_s12 = sld [smem:[#allocation16_spill]] }
 0x2b1   : > { %p18_p1 = scmp.ge.s32.totalorder %s21_s25, 8   ;;  %s2534_s15 = smov %s1855_s16 }
 0x2b2   : > { %s2535_s16 = smov %s1859_s17  ;;  %s2536_s17 = smov %s2060_s1 }
 0x2b3   : > { %s2537_s18 = smov %s1867_s19  ;;  %s2538_s19 = smov %s1871_s20 }
 0x2b4   : > { %s2539_s20 = smov %s2063_s13  ;;  %s2540_s21 = smov %s1883_s23 }
 0x2b5   : > { %s2541_s22 = smov %s1887_s24  ;;  %s2543_s24 = smov %s2549_s14 }
 0x2b6   : > { %s2542_s23 = smov %s2533_s12  ;;  %20 = sbr.rel (!%p18_p1) target bundleno = 15 (0xf), region = 97 }
 0x2bd   :  { %1012 = vsyncpa [#allocation4], 1 }
 0x2be   :  { %1014 = vsyncpa [#allocation4 + $0x1], 1 }
 0x2bf   :  { %1015 = vsyncpa [#allocation7], 1 }
 0x2c0   :  { %1016 = vsyncpa [#allocation5], 1 }
 0x2c1   :  { %1018 = vsyncpa [#allocation5 + $0x1], 1 }

</bundles_post_ra>
